<compile_context>
chip_gen: v6e
topology: v6e:2x2x1
jax: 0.10.0
libtpu: 0.0.40
codegen_flags: <defaults>
</compile_context>

<pallas_src>
import jax
import jax.numpy as jnp
from jax import lax
from jax.experimental import pallas as pl
from jax.experimental.pallas import tpu as pltpu

NUM_GROUPS = 32
EPS = 1e-6

# Keep the scoped-VMEM budget under v7x's 64 MiB physical (plenty on v5e/v6e's 128 MiB).
VMEM_LIMIT_BYTES = 48 * 1024 * 1024


# ---------------------------------------------------------------------------
# Kernel 1: folded GroupNorm affine + fused QKV projection (one (C,3C) matmul)
# ---------------------------------------------------------------------------
def qkv_proj_kernel(x_ref, scale_ref, shift_ref, wqkv_ref, bqkv_ref,
                    q_ref, k_ref, v_ref):
    C = q_ref.shape[-1]
    # x block: (1, T, C); scale/shift block: (1, 1, C)
    h = x_ref[0].astype(jnp.float32) * scale_ref[0] + shift_ref[0]        # (T, C) f32
    # Single fused MXU matmul, bf16 operands, f32 accumulation.
    qkv = jnp.dot(h.astype(jnp.bfloat16), wqkv_ref[...],
                  preferred_element_type=jnp.float32)                     # (T, 3C)
    qkv = qkv + bqkv_ref[...]
    q_ref[0] = qkv[:, :C].astype(q_ref.dtype)
    k_ref[0] = qkv[:, C:2 * C].astype(k_ref.dtype)
    v_ref[0] = qkv[:, 2 * C:].astype(v_ref.dtype)


# ---------------------------------------------------------------------------
# Kernel 2: flash attention (online softmax over KV tiles) + proj_out + residual
# ---------------------------------------------------------------------------
def flash_attn_kernel(q_ref, k_ref, v_ref, xres_ref, wp_ref, bp_ref, o_ref,
                      m_sc, l_sc, acc_sc):
    kv_idx = pl.program_id(2)

    @pl.when(kv_idx == 0)
    def _init():
        m_sc[...] = jnp.full(m_sc.shape, -jnp.inf, dtype=jnp.float32)
        l_sc[...] = jnp.zeros(l_sc.shape, dtype=jnp.float32)
        acc_sc[...] = jnp.zeros(acc_sc.shape, dtype=jnp.float32)

    C = q_ref.shape[-1]
    sm_scale = float(C) ** (-0.5)

    q = q_ref[0]                                                          # (TQ, C) bf16
    k = k_ref[0]                                                          # (TK, C) bf16
    v = v_ref[0]                                                          # (TK, C) bf16

    # logits = q @ k^T without an explicit transpose: contract dim 1 of both operands.
    s = lax.dot_general(q, k, (((1,), (1,)), ((), ())),
                        preferred_element_type=jnp.float32) * sm_scale    # (TQ, TK) f32

    m_prev = m_sc[...]                                                    # (TQ, 1)
    m_new = jnp.maximum(m_prev, jnp.max(s, axis=-1, keepdims=True))
    alpha = jnp.exp(m_prev - m_new)                                       # f32
    p = jnp.exp(s - m_new)                                                # f32
    l_sc[...] = alpha * l_sc[...] + jnp.sum(p, axis=-1, keepdims=True)
    acc_sc[...] = alpha * acc_sc[...] + jnp.dot(
        p.astype(jnp.bfloat16), v, preferred_element_type=jnp.float32)
    m_sc[...] = m_new

    @pl.when(kv_idx == pl.num_programs(2) - 1)
    def _finalize():
        attn_out = acc_sc[...] * pl.reciprocal(l_sc[...], approx=True)    # (TQ, C) f32
        out = jnp.dot(attn_out.astype(jnp.bfloat16), wp_ref[...],
                      preferred_element_type=jnp.float32) + bp_ref[...]
        o_ref[0] = (out + xres_ref[0].astype(jnp.float32)).astype(o_ref.dtype)


# ---------------------------------------------------------------------------
# Wrapper
# ---------------------------------------------------------------------------
def _pick_tile(n, target):
    """Largest multiple-of-8 divisor of n that is <= target (fallback: n)."""
    if n <= target:
        return n
    for t in range(min(target, n), 7, -1):
        if t % 8 == 0 and n % t == 0:
            return t
    return n


def attn_block_pallas(x_nchw, params, *, tq=None, tk=None):
    B, C, H, W = x_nchw.shape
    HW = H * W
    assert C % NUM_GROUPS == 0, "GroupNorm(32) requires channels divisible by 32"

    if tq is None:
        tq = _pick_tile(HW, 256)
    if tk is None:
        tk = _pick_tile(HW, 512)
    assert HW % tq == 0 and HW % tk == 0, "tile sizes must divide H*W"

    # NCHW -> (B, HW, C), channels on the lane axis.
    x = jnp.transpose(x_nchw, (0, 2, 3, 1)).reshape(B, HW, C)

    # --- Precompute GroupNorm stats over the full HW (cheap preceding pass), fold with
    #     gamma/beta into per-(batch, channel) scale/shift. ---
    G, cg = NUM_GROUPS, C // NUM_GROUPS
    xf = x.astype(jnp.float32)
    xg = xf.reshape(B, HW, G, cg)
    mean = jnp.mean(xg, axis=(1, 3), keepdims=True)                       # (B,1,G,1)
    var = jnp.mean(jnp.square(xg - mean), axis=(1, 3), keepdims=True)
    rstd = lax.rsqrt(var + EPS)
    mean_c = jnp.broadcast_to(mean, (B, 1, G, cg)).reshape(B, 1, C)
    rstd_c = jnp.broadcast_to(rstd, (B, 1, G, cg)).reshape(B, 1, C)
    gamma = params["gamma"].reshape(1, 1, C).astype(jnp.float32)
    beta = params["beta"].reshape(1, 1, C).astype(jnp.float32)
    gn_scale = rstd_c * gamma                                             # (B,1,C)
    gn_shift = beta - mean_c * gn_scale                                   # (B,1,C)

    # Conv2d(k=1) weights (Cout, Cin, 1, 1) -> (Cin, Cout), bf16 for the MXU.
    def wmat(w):
        return jnp.transpose(w.reshape(C, C)).astype(jnp.bfloat16)

    wqkv = jnp.concatenate(
        [wmat(params["wq"]), wmat(params["wk"]), wmat(params["wv"])], axis=1)   # (C, 3C)
    bqkv = jnp.concatenate(
        [params["bq"], params["bk"], params["bv"]]).reshape(1, 3 * C).astype(jnp.float32)
    wp = wmat(params["wp"])                                               # (C, C) bf16
    bp = params["bp"].reshape(1, C).astype(jnp.float32)

    # --- Kernel 1: GroupNorm-apply + fused QKV projection, tiled over (B, HW). ---
    q, k, v = pl.pallas_call(
        qkv_proj_kernel,
        out_shape=tuple(jax.ShapeDtypeStruct((B, HW, C), jnp.bfloat16) for _ in range(3)),
        grid=(B, HW // tq),
        in_specs=[
            pl.BlockSpec((1, tq, C), lambda b, t: (b, t, 0)),             # x
            pl.BlockSpec((1, 1, C), lambda b, t: (b, 0, 0)),              # gn_scale
            pl.BlockSpec((1, 1, C), lambda b, t: (b, 0, 0)),              # gn_shift
            pl.BlockSpec((C, 3 * C), lambda b, t: (0, 0)),                # wqkv
            pl.BlockSpec((1, 3 * C), lambda b, t: (0, 0)),                # bqkv
        ],
        out_specs=tuple(pl.BlockSpec((1, tq, C), lambda b, t: (b, t, 0)) for _ in range(3)),
        compiler_params=pltpu.CompilerParams(
            dimension_semantics=("parallel", "parallel"),
            vmem_limit_bytes=VMEM_LIMIT_BYTES),
    )(x, gn_scale, gn_shift, wqkv, bqkv)

    # --- Kernel 2: flash attention + proj_out + residual. ---
    out = pl.pallas_call(
        flash_attn_kernel,
        out_shape=jax.ShapeDtypeStruct((B, HW, C), x.dtype),
        grid=(B, HW // tq, HW // tk),
        in_specs=[
            pl.BlockSpec((1, tq, C), lambda b, i, j: (b, i, 0)),          # q
            pl.BlockSpec((1, tk, C), lambda b, i, j: (b, j, 0)),          # k
            pl.BlockSpec((1, tk, C), lambda b, i, j: (b, j, 0)),          # v
            pl.BlockSpec((1, tq, C), lambda b, i, j: (b, i, 0)),          # x (residual)
            pl.BlockSpec((C, C), lambda b, i, j: (0, 0)),                 # wp
            pl.BlockSpec((1, C), lambda b, i, j: (0, 0)),                 # bp
        ],
        out_specs=pl.BlockSpec((1, tq, C), lambda b, i, j: (b, i, 0)),
        scratch_shapes=[
            pltpu.VMEM((tq, 1), jnp.float32),   # running max  m
            pltpu.VMEM((tq, 1), jnp.float32),   # running sum  l
            pltpu.VMEM((tq, C), jnp.float32),   # accumulator
        ],
        compiler_params=pltpu.CompilerParams(
            dimension_semantics=("parallel", "parallel", "arbitrary"),
            vmem_limit_bytes=VMEM_LIMIT_BYTES),
    )(q, k, v, x, wp, bp)

    # (B, HW, C) -> NCHW
    return jnp.transpose(out.reshape(B, H, W, C), (0, 3, 1, 2))


# ---------------------------------------------------------------------------
# Pure-JAX f32 reference mirroring the PyTorch forward (NCHW)
# ---------------------------------------------------------------------------
def attn_block_ref(x_nchw, params):
    B, C, H, W = x_nchw.shape
    x = x_nchw.astype(jnp.float32)
    xg = x.reshape(B, NUM_GROUPS, C // NUM_GROUPS, H, W)
    mean = jnp.mean(xg, axis=(2, 3, 4), keepdims=True)
    var = jnp.mean(jnp.square(xg - mean), axis=(2, 3, 4), keepdims=True)
    hn = ((xg - mean) / jnp.sqrt(var + EPS)).reshape(B, C, H, W)
    hn = hn * params["gamma"].reshape(1, C, 1, 1) + params["beta"].reshape(1, C, 1, 1)

    def conv1x1(h, w, b):
        wm = w.reshape(C, C)
        return jnp.einsum("oc,bchw->bohw", wm, h) + b.reshape(1, C, 1, 1)

    q = conv1x1(hn, params["wq"], params["bq"]).reshape(B, C, H * W)
    k = conv1x1(hn, params["wk"], params["bk"]).reshape(B, C, H * W)
    v = conv1x1(hn, params["wv"], params["bv"]).reshape(B, C, H * W)
    w_ = jnp.einsum("bci,bcj->bij", q, k) * (float(C) ** -0.5)
    w_ = jax.nn.softmax(w_, axis=2)
    h_ = jnp.einsum("bcj,bij->bci", v, w_).reshape(B, C, H, W)
    h_ = conv1x1(h_, params["wp"], params["bp"])
    return x_nchw + h_.astype(x_nchw.dtype)


def make_params(key, C):
    ks = jax.random.split(key, 8)
    s = 1.0 / jnp.sqrt(C)
    return {
        "gamma": jnp.ones((C,), jnp.float32),
        "beta": jnp.zeros((C,), jnp.float32),
        "wq": jax.random.normal(ks[0], (C, C, 1, 1), jnp.float32) * s,
        "bq": jax.random.normal(ks[1], (C,), jnp.float32) * 0.1,
        "wk": jax.random.normal(ks[2], (C, C, 1, 1), jnp.float32) * s,
        "bk": jax.random.normal(ks[3], (C,), jnp.float32) * 0.1,
        "wv": jax.random.normal(ks[4], (C, C, 1, 1), jnp.float32) * s,
        "bv": jax.random.normal(ks[5], (C,), jnp.float32) * 0.1,
        "wp": jax.random.normal(ks[6], (C, C, 1, 1), jnp.float32) * s,
        "bp": jax.random.normal(ks[7], (C,), jnp.float32) * 0.1,
    }


if __name__ == "__main__":
    key = jax.random.PRNGKey(0)
    k_x, k_p = jax.random.split(key)

    # Small test shape; GroupNorm(32) requires C % 32 == 0.
    B, C, H, W = 2, 64, 8, 8
    x = jax.random.normal(k_x, (B, C, H, W), jnp.float32)
    params = make_params(k_p, C)

    # tq/tk chosen so the multi-tile flash-attention path is exercised (HW=64 -> 2x2 tiles).
    out = jax.block_until_ready(attn_block_pallas(x, params, tq=32, tk=32))
    ref = jax.block_until_ready(attn_block_ref(x, params))

    assert out.shape == x.shape and out.dtype == x.dtype
    # bf16 MXU operands (as recommended) -> tolerance loosened vs the f32 reference.
    assert jnp.allclose(out, ref, rtol=5e-2, atol=5e-2), "mismatch vs reference"
    print("KERNEL_OK")
</pallas_src>

<mosaic_0001>
module attributes {stable_mosaic.version = 11 : i64} {
  func.func @qkv_proj_kernel(%arg0: i32, %arg1: i32, %arg2: memref<1x32x64xf32, #tpu.memory_space<vmem>>, %arg3: memref<1x1x64xf32, #tpu.memory_space<vmem>>, %arg4: memref<1x1x64xf32, #tpu.memory_space<vmem>>, %arg5: memref<64x192xbf16, #tpu.memory_space<vmem>>, %arg6: memref<1x192xf32, #tpu.memory_space<vmem>>, %arg7: memref<1x32x64xbf16, #tpu.memory_space<vmem>>, %arg8: memref<1x32x64xbf16, #tpu.memory_space<vmem>>, %arg9: memref<1x32x64xbf16, #tpu.memory_space<vmem>>) attributes {dimension_semantics = [#tpu.dimension_semantics<parallel>, #tpu.dimension_semantics<parallel>], iteration_bounds = array<i64: 2, 2>, scalar_prefetch = 0 : i64, scratch_operands = 0 : i64, tpu.core_type = #tpu.core_type<tc>, window_params = [{transform_indices = @transform_0, window_bounds = array<i64: 1, 32, 64>}, {transform_indices = @transform_1, window_bounds = array<i64: 1, 1, 64>}, {transform_indices = @transform_2, window_bounds = array<i64: 1, 1, 64>}, {pipeline_mode = #tpu.pipeline_mode<synchronous>, transform_indices = @transform_3, window_bounds = array<i64: 64, 192>}, {pipeline_mode = #tpu.pipeline_mode<synchronous>, transform_indices = @transform_4, window_bounds = array<i64: 1, 192>}, {transform_indices = @transform_5, window_bounds = array<i64: 1, 32, 64>}, {transform_indices = @transform_6, window_bounds = array<i64: 1, 32, 64>}, {transform_indices = @transform_7, window_bounds = array<i64: 1, 32, 64>}]} {
    %c0 = arith.constant 0 : index
    %c0_0 = arith.constant 0 : index
    %c0_1 = arith.constant 0 : index
    %0 = vector.load %arg2[%c0, %c0_0, %c0_1] : memref<1x32x64xf32, #tpu.memory_space<vmem>>, vector<1x32x64xf32>
    %1 = vector.shape_cast %0 : vector<1x32x64xf32> to vector<32x64xf32>
    %c0_2 = arith.constant 0 : index
    %c0_3 = arith.constant 0 : index
    %c0_4 = arith.constant 0 : index
    %2 = vector.load %arg3[%c0_2, %c0_3, %c0_4] : memref<1x1x64xf32, #tpu.memory_space<vmem>>, vector<1x1x64xf32>
    %3 = vector.shape_cast %2 : vector<1x1x64xf32> to vector<1x64xf32>
    %4 = vector.broadcast %3 : vector<1x64xf32> to vector<32x64xf32>
    %5 = arith.mulf %1, %4 : vector<32x64xf32>
    %c0_5 = arith.constant 0 : index
    %c0_6 = arith.constant 0 : index
    %c0_7 = arith.constant 0 : index
    %6 = vector.load %arg4[%c0_5, %c0_6, %c0_7] : memref<1x1x64xf32, #tpu.memory_space<vmem>>, vector<1x1x64xf32>
    %7 = vector.shape_cast %6 : vector<1x1x64xf32> to vector<1x64xf32>
    %8 = vector.broadcast %7 : vector<1x64xf32> to vector<32x64xf32>
    %9 = arith.addf %5, %8 : vector<32x64xf32>
    %10 = arith.truncf %9 : vector<32x64xf32> to vector<32x64xbf16>
    %c0_8 = arith.constant 0 : index
    %c0_9 = arith.constant 0 : index
    %11 = vector.load %arg5[%c0_8, %c0_9] : memref<64x192xbf16, #tpu.memory_space<vmem>>, vector<64x192xbf16>
    %cst = arith.constant dense<0.000000e+00> : vector<32x192xf32>
    %12 = tpu.matmul %10, %11, %cst {dimension_numbers = #tpu.dot_dimension_numbers<[1], [0], [0], [1], [0, 0, 1, 1], [], []>} : vector<32x64xbf16>, vector<64x192xbf16>, vector<32x192xf32> -> vector<32x192xf32>
    %c0_10 = arith.constant 0 : index
    %c0_11 = arith.constant 0 : index
    %13 = vector.load %arg6[%c0_10, %c0_11] : memref<1x192xf32, #tpu.memory_space<vmem>>, vector<1x192xf32>
    %14 = vector.broadcast %13 : vector<1x192xf32> to vector<32x192xf32>
    %15 = arith.addf %12, %14 : vector<32x192xf32>
    %16 = vector.extract_strided_slice %15 {offsets = [0, 0], sizes = [32, 64], strides = [1, 1]} : vector<32x192xf32> to vector<32x64xf32>
    %17 = arith.truncf %16 : vector<32x64xf32> to vector<32x64xbf16>
    %c0_12 = arith.constant 0 : index
    %c0_13 = arith.constant 0 : index
    %c0_14 = arith.constant 0 : index
    %18 = vector.load %arg7[%c0_12, %c0_13, %c0_14] : memref<1x32x64xbf16, #tpu.memory_space<vmem>>, vector<1x32x64xbf16>
    %19 = vector.shape_cast %18 : vector<1x32x64xbf16> to vector<32x64xbf16>
    %20 = vector.shape_cast %17 : vector<32x64xbf16> to vector<1x32x64xbf16>
    tpu.vector_store %arg7[%c0_12, %c0_13, %c0_14], %20 {strides = array<i32>} : memref<1x32x64xbf16, #tpu.memory_space<vmem>>, vector<1x32x64xbf16>,
    %21 = vector.extract_strided_slice %15 {offsets = [0, 64], sizes = [32, 64], strides = [1, 1]} : vector<32x192xf32> to vector<32x64xf32>
    %22 = arith.truncf %21 : vector<32x64xf32> to vector<32x64xbf16>
    %c0_15 = arith.constant 0 : index
    %c0_16 = arith.constant 0 : index
    %c0_17 = arith.constant 0 : index
    %23 = vector.load %arg8[%c0_15, %c0_16, %c0_17] : memref<1x32x64xbf16, #tpu.memory_space<vmem>>, vector<1x32x64xbf16>
    %24 = vector.shape_cast %23 : vector<1x32x64xbf16> to vector<32x64xbf16>
    %25 = vector.shape_cast %22 : vector<32x64xbf16> to vector<1x32x64xbf16>
    tpu.vector_store %arg8[%c0_15, %c0_16, %c0_17], %25 {strides = array<i32>} : memref<1x32x64xbf16, #tpu.memory_space<vmem>>, vector<1x32x64xbf16>,
    %26 = vector.extract_strided_slice %15 {offsets = [0, 128], sizes = [32, 64], strides = [1, 1]} : vector<32x192xf32> to vector<32x64xf32>
    %27 = arith.truncf %26 : vector<32x64xf32> to vector<32x64xbf16>
    %c0_18 = arith.constant 0 : index
    %c0_19 = arith.constant 0 : index
    %c0_20 = arith.constant 0 : index
    %28 = vector.load %arg9[%c0_18, %c0_19, %c0_20] : memref<1x32x64xbf16, #tpu.memory_space<vmem>>, vector<1x32x64xbf16>
    %29 = vector.shape_cast %28 : vector<1x32x64xbf16> to vector<32x64xbf16>
    %30 = vector.shape_cast %27 : vector<32x64xbf16> to vector<1x32x64xbf16>
    tpu.vector_store %arg9[%c0_18, %c0_19, %c0_20], %30 {strides = array<i32>} : memref<1x32x64xbf16, #tpu.memory_space<vmem>>, vector<1x32x64xbf16>,
    return
  }
  func.func @transform_0(%arg0: i32, %arg1: i32) -> (i32, i32, i32) {
    %c0_i32 = arith.constant 0 : i32
    %c0_i32_0 = arith.constant 0 : i32
    return %arg0, %arg1, %c0_i32 : i32, i32, i32
  }
  func.func @transform_1(%arg0: i32, %arg1: i32) -> (i32, i32, i32) {
    %c0_i32 = arith.constant 0 : i32
    %c0_i32_0 = arith.constant 0 : i32
    %c0_i32_1 = arith.constant 0 : i32
    return %arg0, %c0_i32, %c0_i32_0 : i32, i32, i32
  }
  func.func @transform_2(%arg0: i32, %arg1: i32) -> (i32, i32, i32) {
    %c0_i32 = arith.constant 0 : i32
    %c0_i32_0 = arith.constant 0 : i32
    %c0_i32_1 = arith.constant 0 : i32
    return %arg0, %c0_i32, %c0_i32_0 : i32, i32, i32
  }
  func.func @transform_3(%arg0: i32, %arg1: i32) -> (i32, i32) {
    %c0_i32 = arith.constant 0 : i32
    %c0_i32_0 = arith.constant 0 : i32
    %c0_i32_1 = arith.constant 0 : i32
    return %c0_i32, %c0_i32_0 : i32, i32
  }
  func.func @transform_4(%arg0: i32, %arg1: i32) -> (i32, i32) {
    %c0_i32 = arith.constant 0 : i32
    %c0_i32_0 = arith.constant 0 : i32
    %c0_i32_1 = arith.constant 0 : i32
    return %c0_i32, %c0_i32_0 : i32, i32
  }
  func.func @transform_5(%arg0: i32, %arg1: i32) -> (i32, i32, i32) {
    %c0_i32 = arith.constant 0 : i32
    %c0_i32_0 = arith.constant 0 : i32
    return %arg0, %arg1, %c0_i32 : i32, i32, i32
  }
  func.func @transform_6(%arg0: i32, %arg1: i32) -> (i32, i32, i32) {
    %c0_i32 = arith.constant 0 : i32
    %c0_i32_0 = arith.constant 0 : i32
    return %arg0, %arg1, %c0_i32 : i32, i32, i32
  }
  func.func @transform_7(%arg0: i32, %arg1: i32) -> (i32, i32, i32) {
    %c0_i32 = arith.constant 0 : i32
    %c0_i32_0 = arith.constant 0 : i32
    return %arg0, %arg1, %c0_i32 : i32, i32, i32
  }
}

</mosaic_0001>

<bundles_post_ra>
// kernel: tpu_custom_call.1
= control target key start
LH: loop header
LB: loop body
LE: loop exit
PB: predicated region body
PF: predicated region fallthrough
CT: control target
= control target key end

     0   :  { %s1788_s0 = inlined_call_operand.hbm [shape: f32[2,64,64], index: 0, kind: input, shape index: {}]   ;;  %s1789_s1 = inlined_call_operand.hbm [shape: f32[2,1,64], index: 1, kind: input, shape index: {}]   ;;  %s1790_s2 = inlined_call_operand.vmem [shape: f32[2,1,64], index: 2, kind: input, shape index: {}]   ;;  %s1791_s3 = inlined_call_operand.hbm [shape: bf16[64,192], index: 3, kind: input, shape index: {}]   ;;  %s1792_s4 = inlined_call_operand.vmem [shape: f32[1,192], index: 4, kind: input, shape index: {}]   ;;  %s1793_s5 = inlined_call_operand.hbm [shape: bf16[2,64,64], index: 5, kind: output, shape index: {0}]   ;;  %s1794_s6 = inlined_call_operand.hbm [shape: bf16[2,64,64], index: 6, kind: output, shape index: {1}]   ;;  %s1795_s7 = inlined_call_operand.hbm [shape: bf16[2,64,64], index: 7, kind: output, shape index: {2}]  }
   0x1   :  { %1814 = sst [smem:[#allocation24_spill]] %s1790_s2 }
   0x2   :  { %1815 = sst [smem:[#allocation25_spill]] %s1791_s3 }
   0x3   :  { %1816 = sst [smem:[#allocation26_spill]] %s1792_s4 }
   0x4   :  { %1817 = sst [smem:[#allocation27_spill]] %s1793_s5 }
   0x5   :  { %1818 = sst [smem:[#allocation28_spill]] %s1794_s6 }
   0x6   :  { %1819 = sst [smem:[#allocation29_spill]] %s1795_s7 }
   0x7   :  { %13 = vsyncpa [#allocation3], 0 }
   0x8   :  { %15 = vsyncpa [#allocation3 + $0x1], 0 }
   0x9   :  { %16 = vsyncpa [#allocation6], 0 }
   0xa   :  { %18 = vsyncpa [#allocation6 + $0x1], 0 }
   0xb   :  { %19 = vsyncpa [#allocation4], 0 }
   0xc   :  { %21 = vsyncpa [#allocation4 + $0x1], 0 }
   0xd   :  { %22 = vsyncpa [#allocation10], 0 }
   0xe   :  { %24 = vsyncpa [#allocation10 + $0x1], 0  ;;  %s1396_s24 = smov 0   ;;  %s1398_s25 = smov 0  }
   0xf   :  { %s1400_s26 = smov 0   ;;  %s1402_s27 = smov 0  }
  0x10   :  { %s1404_s28 = smov 0   ;;  %s1406_s29 = smov 0  }
  0x11   :  { %s1408_s30 = smov 0   ;;  %s1410_s8 = smov 0  }
  0x12   :  { %s1412_s9 = smov 0   ;;  %s1414_s10 = smov 0  }
  0x13   :  { %s1416_s11 = smov 0  }
  0x14 LB: > { %1820 = sst [smem:[#allocation17_spill]] %s1315_s27  ;;  %s1452_s12 = sadd.s32 4294967295, %s1343_s11   ;;  %s1343_s11 = sphi %s1416_s11, %s30_s11   ;;  %s1339_s10 = sphi %s1414_s10, %s1869_s10   ;;  %s1335_s9 = sphi %s1412_s9, %s1860_s9   ;;  %s1331_s8 = sphi %s1410_s8, %s1868_s8   ;;  %s1327_s30 = sphi %s1408_s30, %s1859_s30   ;;  %s1323_s29 = sphi %s1406_s29, %s1867_s29   ;;  %s1319_s28 = sphi %s1404_s28, %s1866_s28   ;;  %s1315_s27 = sphi %s1402_s27, %s1865_s27   ;;  %s1311_s26 = sphi %s1400_s26, %s1864_s26   ;;  %s1307_s25 = sphi %s1398_s25, %s1863_s25   ;;  %s1303_s24 = sphi %s1396_s24, %s1862_s24  }
  0x15   : > { %1821 = sst [smem:[#allocation18_spill]] %s1327_s30  ;;  %s1796_s13 = sadd.s32 4294967294, %s1343_s11  }
  0x16   : > { %1822 = sst [smem:[#allocation19_spill]] %s1335_s9  ;;  %p64_p0 = scmp.ne.s32.totalorder %s1319_s28, %s1315_s27 }
  0x17   : > { %p1809_p1 = scmp.eq.s32.totalorder %s1452_s12, 0  ;;  %p190_p3 = scmp.eq.s32.totalorder %s1796_s13, 3 }
  0x18   : > { %p868_p5 = scmp.ge.s32.totalorder %s1343_s11, 1  ;;  %p253_p7 = scmp.lt.s32.totalorder %s1343_s11, 5 }
  0x19   : > { %p1463_p4 = por %p1809_p1, %p64_p0  ;;  %p1468_p6 = por %p190_p3, %p64_p0 }
  0x1a   : > { %p1473_p8 = pnand %p868_p5, %p253_p7  ;;  %s1345_s17 = smov [#allocation7]  }
  0x1b   : > { %s1824_s15 = scalar_select %p1468_p6, 1, 0 }
  0x1c   : > { %s265_s18 = sshll.u32 %s1345_s17, 4  ;;  %p946_p9 = pneg %p1473_p8  ;;  %s266_s18 = int_to_ptr.vmem [resolvable:$true] %s265_s18 }
  0x1d   : > { %1825 = sst [smem:[#allocation20_spill]] %s1824_s15  ;;  %s1088_s19 = scalar_lea.vmem %s266_s18, 1024 }
  0x1e   : > { %p947_p10 = pnand %p946_p9, %p1809_p1  ;;  %p1089_p12 = scmp.ne.s32.totalorder %s266_s18, %s1088_s19 }
  0x1f   : > { %p1096_p3 = scmp.lt.s32.totalorder %s266_s18, %s266_s18  ;;  %p1097_p2 = scmp.lt.s32.totalorder %s1088_s19, %s1088_s19 }
  0x20   : > { %p1079_p11 = pneg %p947_p10 }
  0x21   : > { %p1098_p6 = por %p1097_p2, %p1096_p3 }
  0x22   : > { %p1091_p13 = pnand %p1089_p12, %p1079_p11 }
  0x24   : > { %p1092_p0 = pneg %p1091_p13 }
  0x26   : > { %p1099_p5 = pnand %p1098_p6, %p1092_p0 }
  0x28   : > { %1102 = shalt.err (!%p1099_p5)
}
  0x29   : > { %s1798_s20 = smov 128   ;;  %s1799_s21 = smov 8  }
  0x2a   : > { %s1827_s3 = sld [smem:[#allocation25_spill]]  ;;  %s39_s17 = sadd.s32 1, %s1335_s9 }
  0x2b   : > { %p40_p2 = scmp.ge.s32.totalorder %s39_s17, 2  ;;  %s42_s19 = sadd.s32 1, %s1339_s10 }
  0x2c   : > { %s51_s13 = sadd.s32 1, %s1323_s29  ;;  %p58_p6 = scmp.ne.s32.totalorder %s1323_s29, %s1319_s28 }
  0x2d   : > { %s1871_s17 = smov (%p40_p2, %s39_s17), 0  ;;  %s1873_s19 = smov (!%p40_p2, %s42_s19), %s1339_s10 }
  0x2e   : > { %1828 = sst [smem:[#allocation21_spill]] %s1871_s17  ;;  %s47_s15 = ssub.s32 %s1335_s9, %s1871_s17 }
  0x2f   : > { %p1810_p7 = scmp.eq.s32.totalorder %s1343_s11, 0  ;;  %p44_p9 = scmp.ge.s32.totalorder %s1873_s19, 2 }
  0x30   : > { %949 = dma.hbm_to_vmem [thread:$0]  (!%p947_p10), %s1827_s3, 1024, %s266_s18, [#allocation6], %s1798_s20, %s1798_s20, %s1799_s21  }
  0x31   : > { %p1829_p11 = scmp.eq.s32.totalorder %s1452_s12, 3  ;;  %p1506_p10 = por %p1810_p7, %p58_p6 }
  0x32   : > { %p968_p13 = scmp.lt.s32.totalorder %s1343_s11, 4  ;;  %s1875_s19 = smov (%p44_p9, %s1873_s19), 0 }
  0x33   : > { %p1500_p12 = por %p1829_p11, %p58_p6  ;;  %1833 = sst [smem:[#allocation23_spill]] %s1875_s19 }
  0x34   : > { %s282_s23 = sand.u32 1, %s1323_s29   ;;  %s872_s20 = sshll.u32 %s1335_s9, 2 }
  0x35   : > { %s1830_s22 = scalar_select %p1500_p12, 1, 0 }
  0x36   : > { %s1517_s21 = ssub.s32 %s1339_s10, %s1875_s19  ;;  %s871_s17 = sshll.u32 %s282_s23, 5 }
  0x37   : > { %1831 = sst [smem:[#allocation22_spill]] %s1830_s22  ;;  %s48_s3 = sor.u32 %s47_s15, %s1517_s21 }
  0x38   : > { %p49_p3 = scmp.eq.s32.totalorder %s48_s3, 0  ;;  %s873_s27 = sshll.u32 %s1339_s10, 3 }
  0x39   : > { %s292_s6 = sadd.s32 %s873_s27, %s872_s20  ;;  %s286_s5 = scalar_lea.vmem [#allocation2], %s871_s17 }
  0x3a   : > { %s1523_s7 = scalar_select %p49_p3, %s1323_s29, %s51_s13  }
  0x3b   : > { %s295_s22 = sshll.u32 %s286_s5, 4  ;;  %s874_s4 = sshll.u32 %s292_s6, 7  ;;  %s296_s22 = int_to_ptr.vmem [resolvable:$true] %s295_s22 }
  0x3c   : > { %s294_s9 = scalar_lea.hbm %s1788_s0, %s874_s4  ;;  %p1532_p5 = pnand %p968_p13, %p1506_p10 }
  0x3d   : > { %s283_s3 = scalar_lea.sflag [#allocation3], %s282_s23  ;;  %s1116_s13 = scalar_lea.vmem %s296_s22, 512 }
  0x3e   : > { %p1105_p2 = pneg %p1532_p5  ;;  %p1117_p6 = scmp.ne.s32.totalorder %s296_s22, %s1116_s13 }
  0x3f   : > { %s1348_s5 = smov [#allocation2]  }
  0x40   : > { %p1119_p9 = pnand %p1117_p6, %p1105_p2  ;;  %s1121_s6 = sshll.u32 %s1348_s5, 4  ;;  %s1122_s6 = int_to_ptr.vmem [resolvable:$false] %s1121_s6 }
  0x41   : > { %s1123_s27 = scalar_lea.vmem %s1122_s6, 1024  ;;  %p1124_p3 = scmp.lt.s32.totalorder %s296_s22, %s1122_s6 }
  0x42   : > { %p1120_p11 = pneg %p1119_p9  ;;  %p1125_p1 = scmp.lt.s32.totalorder %s1123_s27, %s1116_s13 }
  0x44   : > { %p1126_p7 = por %p1125_p1, %p1124_p3 }
  0x46   : > { %p1127_p0 = pnand %p1126_p7, %p1120_p11 }
  0x48   : > { %1130 = shalt.err (!%p1127_p0)
}
  0x49   : > { %s1835_s2 = smov 8   ;;  %s1836_s4 = smov 128  }
  0x4a   : > { %953 = dma.hbm_to_vmem [thread:$0]  (!%p1532_p5), %s294_s9, 512, %s296_s22, %s283_s3, %s1836_s4, %s1836_s4, %s1835_s2  }
  0x4b   : > { %s77_s30 = sadd.s32 1, %s1311_s26  ;;  %p1837_p1 = scmp.eq.s32.totalorder %s1517_s21, 0 }
  0x4c   : > { %p84_p7 = scmp.ne.s32.totalorder %s1311_s26, %s1307_s25  ;;  %p90_p10 = scmp.ne.s32.totalorder %s1307_s25, %s1303_s24 }
  0x4d   : > { %s1547_s15 = scalar_select %p1837_p1, %s1311_s26, %s77_s30  }
  0x4e   : > { %s305_s20 = sand.u32 1, %s1343_s11   ;;  %s307_s17 = sand.u32 1, %s1311_s26  }
  0x4f   : > { %p1838_p0 = scmp.eq.s32.totalorder %s1343_s11, 0  ;;  %p1839_p6 = scmp.eq.s32.totalorder %s1452_s12, 0 }
  0x50   : > { %s875_s18 = sshll.u32 %s1339_s10, 4  ;;  %s308_s23 = scalar_lea.vmem [#allocation5], %s307_s17 }
  0x51   : > { %p86_p2 = por %p84_p7, %p1838_p0  ;;  %p1559_p9 = por %p90_p10, %p1839_p6 }
  0x52   : > { %s315_s13 = sshll.u32 %s308_s23, 4  ;;  %s313_s21 = scalar_lea.hbm %s1789_s1, %s875_s18  ;;  %s316_s13 = int_to_ptr.vmem [resolvable:$true] %s315_s13 }
  0x53   : > { %p1569_p5 = pnand %p968_p13, %p86_p2  ;;  %s306_s22 = scalar_lea.sflag [#allocation6], %s305_s20 }
  0x54   : > { %s1144_s3 = scalar_lea.vmem %s316_s13, 16  ;;  %s1349_s6 = smov [#allocation5]  }
  0x55   : > { %p1133_p11 = pneg %p1569_p5  ;;  %p1145_p3 = scmp.ne.s32.totalorder %s316_s13, %s1144_s3 }
  0x56   : > { %s1149_s27 = sshll.u32 %s1349_s6, 4  ;;  %s1150_s27 = int_to_ptr.vmem [resolvable:$false] %s1149_s27 }
  0x57   : > { %p1147_p1 = pnand %p1145_p3, %p1133_p11  ;;  %s1151_s2 = scalar_lea.vmem %s1150_s27, 32 }
  0x58   : > { %p1152_p10 = scmp.lt.s32.totalorder %s316_s13, %s1150_s27  ;;  %p1153_p0 = scmp.lt.s32.totalorder %s1151_s2, %s1144_s3 }
  0x59   : > { %p1148_p7 = pneg %p1147_p1 }
  0x5a   : > { %p1154_p6 = por %p1153_p0, %p1152_p10 }
  0x5c   : > { %p1155_p12 = pnand %p1154_p6, %p1148_p7 }
  0x5e   : > { %1158 = shalt.err (!%p1155_p12)
}
  0x5f   : > { %956 = dma.hbm_to_vmem [thread:$0]  (!%p1569_p5), %s313_s21, 16, %s316_s13, %s306_s22  }
  0x60   : > { %330 = sbr.rel (%p1473_p8) target bundleno = 478 (0x1de), region = 40  ;;  %s1580_s4 = sand.u32 (!%p1473_p8), 1, %s1319_s28  }
  0x61   : > { %s877_s30 = sshll.u32 (!%p1473_p8), %s1580_s4, 5  ;;  %s333_s20 = scalar_lea.sflag (!%p1473_p8), [#allocation3], %s1580_s4 }
  0x62   : > { %s1584_s17 = scalar_lea.vmem (!%p1473_p8), [#allocation2], %s877_s30 }
  0x65   : > { %1282 = dma.done.wait (%p1463_p4), %s333_s20, 512  }
  0x66   : > { %1284 = vsyncadd (%p1463_p4), %s333_s20, 4294966784  ;;  %s341_s16 = sand.u32 1, %s1452_s12   ;;  %s343_s18 = sand.u32 1, %s1307_s25  }
  0x67   : > { %s342_s23 = scalar_lea.sflag [#allocation6], %s341_s16  ;;  %s344_s13 = scalar_lea.vmem [#allocation5], %s343_s18 }
  0x68   : > { %1286 = dma.done.wait (%p1559_p9), %s342_s23, 16  }
  0x69   : > { %1288 = vsyncadd (%p1559_p9), %s342_s23, 4294967280  ;;  %p1842_p8 = scmp.eq.s32.totalorder %s1452_s12, 0 }
  0x6b   : > { %1290 = dma.done.wait (%p1842_p8), [#allocation6], 1024   ;;  %p1843_p12 = pmov %p1842_p8 }
  0x6c   : > { %v1350_v0 = vmov 0   ;;  %p397_p4 = scmp.lt.s32.totalorder %s1331_s8, 1  ;;  %v1065_v1 = vld [vmem:[#allocation7 + $0x34] ss:$8 sps:$4 sm:$0xff]   ;;  %v1067_v2 = vld [vmem:[#allocation7 + $0x30] ss:$8 sps:$4 sm:$0xff]   ;;  %v442_v25 = vlaneseq }
  0x6d   : > { %1292 = vsyncadd (%p1843_p12), [#allocation6], 4294966272  ;;  %531 = vmatprep.mubr.bf16.mxu0 %v1350_v0  ;;  %541 = vmatprep.mubr.bf16.mxu1 %v1350_v0  ;;  %v1068_v3 = vld [vmem:[#allocation7 + $0x24] ss:$8 sps:$4 sm:$0xff]   ;;  %v1070_v4 = vld [vmem:[#allocation7 + $0x20] ss:$8 sps:$4 sm:$0xff]  }
  0x6e   : > { %s398_s14 = scalar_select %p397_p4, %s1331_s8, 1  ;;  %507 = vmatprep.subr.bf16.mxu0 %v1065_v1  ;;  %924 = vmatprep.subr.bf16.mxu1 %v1065_v1  ;;  %v1071_v5 = vld [vmem:[#allocation7 + $0x14] ss:$8 sps:$4 sm:$0xff]   ;;  %v405_v7 = vld [vmem:[%s1584_s17 + $0x8] sm:$0xff]  ;;  %v1073_v10 = vld [vmem:[#allocation7 + $0x10] ss:$8 sps:$4 sm:$0xff]  }
  0x6f   : > { %508 = vmatpush1.bf16.msra.mxu0 %v1067_v2  ;;  %928 = vmatpush1.bf16.msra.mxu1 %v1067_v2  ;;  %s1844_s9 = sld [smem:[#allocation24_spill]]  ;;  %v404_v6 = vld [vmem:[%s1584_s17] sm:$0xff]  ;;  %v406_v9 = vld [vmem:[%s1584_s17 + $0x10] sm:$0xff]  ;;  %v407_v14 = vld [vmem:[%s1584_s17 + $0x18] sm:$0xff]  ;;  %vm492_vm0 = vcmask 523264   ;;  %v443_v26 = vshrl.u32 %v442_v25, 7 }
  0x70   : > { %509 = vmatprep.subr.bf16.mxu0 %v1068_v3  ;;  %925 = vmatprep.subr.bf16.mxu1 %v1068_v3  ;;  %v882_v8 = vld [vmem:[%s344_s13] ss:$0 sm:$0xff]  ;;  %v1074_v16 = vld [vmem:[#allocation7 + $0x4] ss:$8 sps:$4 sm:$0xff]   ;;  %v1076_v22 = vld [vmem:[#allocation7] ss:$8 sps:$4 sm:$0xff]  }
  0x71   : > { %v415_v11 = vmul.f32 %v882_v8, %v404_v6  ;;  %v416_v12 = vmul.f32 %v882_v8, %v405_v7  ;;  %v417_v15 = vmul.f32 %v882_v8, %v406_v9  ;;  %v418_v17 = vmul.f32 %v882_v8, %v407_v14  ;;  %s1845_s24 = sld [smem:[#allocation18_spill]]  ;;  %s1615_s27 = sshll.u32 %s1580_s4, 4 }
  0x72   : > { %v444_v27 = vsub.s32 0, %v443_v26  ;;  %s1846_s6 = sld [smem:[#allocation26_spill]]  ;;  %v448_v29 = vsub.s32 1, %v443_v26  ;;  %s906_s30 = sshll.u32 %s1331_s8, 3  ;;  %vm568_vm1 = vcmask 519168  }
  0x73   : > { %510 = vmatpush1.bf16.msra.mxu0 %v1070_v4  ;;  %929 = vmatpush1.bf16.msra.mxu1 %v1070_v4  ;;  %s381_s17 = scalar_lea.vmem [#allocation8], %s1615_s27  ;;  %s1812_s8 = smov 64  }
  0x74   : > { %511 = vmatprep.subr.bf16.mxu0 %v1071_v5  ;;  %926 = vmatprep.subr.bf16.mxu1 %v1071_v5  ;;  %s635_s18 = sshll.u32 %s381_s17, 4  ;;  %s1629_s13 = scalar_lea.vmem [#allocation11], %s1615_s27  ;;  %s1626_s18 = int_to_ptr.vmem [resolvable:$true] %s635_s18 }
  0x75   : > { %s399_s21 = scalar_lea.vmem %s1844_s9, %s398_s14  ;;  %s1847_s14 = sld [smem:[#allocation22_spill]] }
  0x76   : > { %v883_v13 = vld [vmem:[%s399_s21] ss:$0 sm:$0xff]  ;;  %s1848_s9 = sld [smem:[#allocation27_spill]]  ;;  %s610_s22 = scalar_lea.sflag [#allocation4], %s1580_s4 }
  0x77   : > { %v426_v18 = vadd.f32 %v883_v13, %v415_v11  ;;  %v427_v19 = vadd.f32 %v883_v13, %v416_v12  ;;  %v428_v20 = vadd.f32 %v883_v13, %v417_v15  ;;  %v429_v21 = vadd.f32 %v883_v13, %v418_v17  ;;  %512 = vmatpush1.bf16.msra.mxu0 %v1073_v10  ;;  %s905_s2 = sshll.u32 %s1845_s24, 2  ;;  %s1159_s3 = scalar_lea.vmem %s1626_s18, 256 }
  0x78   : > { %930 = vmatpush1.bf16.msra.mxu1 %v1073_v10  ;;  %513 = vmatprep.subr.bf16.mxu0 %v1074_v16  ;;  %v440_v28 = vld [vmem:[%s1846_s6] sm:$0x3]  ;;  %s632_s20 = sadd.s32 %s906_s30, %s905_s2  ;;  %p1160_p13 = scmp.ne.s32.totalorder %s1626_s18, %s1159_s3 }
  0x79   : > { %927 = vmatprep.subr.bf16.mxu1 %v1074_v16  ;;  %v430_v23 = vpack.c.bf16 %v427_v19, %v426_v18  ;;  %v431_v24 = vpack.c.bf16 %v429_v21, %v428_v20  ;;  %v445_v30 = vrot.slane %v440_v28, %v444_v27  ;;  %v449_v31 = vrot.slane %v440_v28, %v448_v29  ;;  %s1623_s23 = sshll.u32 %s632_s20, 6  ;;  %s1352_s6 = smov [#allocation8]  }
  0x7a   : > { %s1163_s2 = sshll.u32 %s1352_s6, 4  ;;  %s1164_s2 = int_to_ptr.vmem [resolvable:$false] %s1163_s2 }
  0x7b   : > { %514 = vmatpush1.bf16.msra.mxu0 %v1076_v22  ;;  %p1850_p2 = scmp.ne.s32.totalorder %s1847_s14, 0  ;;  %s1165_s30 = scalar_lea.vmem %s1164_s2, 512 }
  0x7c   : > { %931 = vmatpush1.bf16.msra.mxu1 %v1076_v22  ;;  %s1849_s21 = smov %s1848_s9  ;;  %s1639_s24 = scalar_lea.hbm %s1848_s9, %s1623_s23 }
  0x7d   : > { %p1161_p9 = pnand %p1160_p13, %p1850_p2  ;;  %p1166_p11 = scmp.lt.s32.totalorder %s1626_s18, %s1164_s2 }
  0x7e   : > { %892 = vmatmul.mubr.msk.bf16.vlgmr.msra.gmra.mxu0 %vm492_vm0, %v430_v23  ;;  %p1167_p3 = scmp.lt.s32.totalorder %s1165_s30, %s1159_s3 }
  0x7f   : > { %893 = vmatmul.mubr.msk.bf16.vlgmr.msra.gmra.mxu1 %vm492_vm0, %v431_v24  ;;  %p1162_p5 = pneg %p1161_p9 }
  0x80   : > { %p1168_p1 = por %p1167_p3, %p1166_p11 }
  0x82   : > { %p1169_p7 = pnand %p1168_p1, %p1162_p5 }
 0x13e   : > { %v533_v32 = vpop.f32.mrf.mxu0 }
 0x13f   : > { %v543_v33 = vpop.f32.mrf.mxu1  ;;  %v534_v34 = vadd.f32 %v533_v32, %v445_v30 }
 0x140   : > { %v544_v35 = vadd.f32 %v543_v33, %v445_v30  ;;  %v535_v36 = vpop.f32.mrf.mxu0 }
 0x141   : > { %v545_v37 = vpop.f32.mrf.mxu1  ;;  %v916_v38 = vpack.c.bf16 %v534_v34, %v534_v34  ;;  %v536_v40 = vadd.f32 %v535_v36, %v449_v31 }
 0x142   : > { %v918_v39 = vpack.c.bf16 %v544_v35, %v544_v35  ;;  %v546_v41 = vadd.f32 %v545_v37, %v449_v31  ;;  %v537_v42 = vpop.f32.mrf.mxu0 }
 0x143   : > { %v547_v43 = vpop.f32.mrf.mxu1  ;;  %569 = vst.msk [vmem:[%s381_s17] sm:$0xf] %vm568_vm1, %v916_v38  ;;  %v920_v44 = vpack.c.bf16 %v536_v40, %v536_v40  ;;  %v538_v46 = vadd.f32 %v537_v42, %v445_v30  ;;  %573 = vrot.lane.b32.xlu0 %v916_v38, %s1812_s8 }
 0x144   : > { %571 = vst.msk [vmem:[%s381_s17 + $0x8] sm:$0xf] %vm568_vm1, %v918_v39  ;;  %v922_v45 = vpack.c.bf16 %v546_v41, %v546_v41  ;;  %v548_v47 = vadd.f32 %v547_v43, %v445_v30  ;;  %577 = vrot.lane.b32.xlu1 %v918_v39, %s1812_s8  ;;  %v539_v48 = vpop.f32.mrf.mxu0 }
 0x145   : > { %v549_v49 = vpop.f32.mrf.mxu1  ;;  %605 = vst.msk [vmem:[%s1629_s13] sm:$0xf] %vm568_vm1, %v920_v44  ;;  %v917_v50 = vpack.c.bf16 %v538_v46, %v538_v46  ;;  %v540_v52 = vadd.f32 %v539_v48, %v449_v31 }
 0x146   : > { %607 = vst.msk [vmem:[%s1629_s13 + $0x8] sm:$0xf] %vm568_vm1, %v922_v45  ;;  %v919_v51 = vpack.c.bf16 %v548_v47, %v548_v47  ;;  %v550_v53 = vadd.f32 %v549_v49, %v449_v31 }
 0x147   : > { %570 = vst.msk [vmem:[%s381_s17 + $0x4] sm:$0xf] %vm568_vm1, %v917_v50  ;;  %v921_v54 = vpack.c.bf16 %v540_v52, %v540_v52  ;;  %575 = vrot.lane.b32.xlu0 %v917_v50, %s1812_s8 }
 0x148   : > { %572 = vst.msk [vmem:[%s381_s17 + $0xc] sm:$0xf] %vm568_vm1, %v919_v51  ;;  %v923_v55 = vpack.c.bf16 %v550_v53, %v550_v53  ;;  %579 = vrot.lane.b32.xlu1 %v919_v51, %s1812_s8 }
 0x149   : > { %606 = vst.msk [vmem:[%s1629_s13 + $0x4] sm:$0xf] %vm568_vm1, %v921_v54 }
 0x14a   : > { %608 = vst.msk [vmem:[%s1629_s13 + $0xc] sm:$0xf] %vm568_vm1, %v923_v55 }
 0x14b   : > { %1172 = shalt.err (!%p1169_p7)
}
 0x14c   : > { %s1173_s20 = scalar_lea.hbm %s1639_s24, 256  ;;  %s1177_s5 = scalar_lea.hbm %s1849_s21, 1024 }
 0x14d   : > { %p1174_p10 = scmp.ne.s32.totalorder %s1639_s24, %s1173_s20  ;;  %p1178_p8 = scmp.lt.s32.totalorder %s1639_s24, %s1849_s21 }
 0x14e   : > { %p1179_p12 = scmp.lt.s32.totalorder %s1177_s5, %s1173_s20 }
 0x14f   : > { %p1175_p0 = pnand %p1174_p10, %p1850_p2 }
 0x150   : > { %p1180_p4 = por %p1179_p12, %p1178_p8 }
 0x151   : > { %p1176_p6 = pneg %p1175_p0 }
 0x153   : > { %p1181_p13 = pnand %p1180_p4, %p1176_p6 }
 0x155   : > { %1184 = shalt.err (!%p1181_p13)
}
 0x156   : > { %s1353_s3 = smov 4   ;;  %s388_s2 = scalar_lea.vmem [#allocation9], %s1615_s27 }
 0x157   : > { %940 = dma.vmem_to_hbm [thread:$0]  (%p1850_p2), %s1626_s18, 256, %s1639_s24, %s610_s22, %s1812_s8, %s1812_s8, %s1353_s3  }
 0x158   : > { %s653_s30 = sshll.u32 %s388_s2, 4  ;;  %s671_s20 = sshll.u32 %s1629_s13, 4  ;;  %s1679_s30 = int_to_ptr.vmem [resolvable:$true] %s653_s30  ;;  %s1687_s20 = int_to_ptr.vmem [resolvable:$true] %s671_s20 }
 0x159   : > { %s1851_s19 = sld [smem:[#allocation28_spill]]  ;;  %s1699_s9 = scalar_lea.sflag [#allocation10], %s341_s16 }
 0x15a   : > { %s1852_s24 = sld [smem:[#allocation29_spill]]  ;;  %s1185_s6 = scalar_lea.vmem %s1679_s30, 256 }
 0x15b   : > { %p1186_p9 = scmp.ne.s32.totalorder %s1679_s30, %s1185_s6  ;;  %s1354_s4 = smov [#allocation9]  }
 0x15c   : > { %s1189_s17 = sshll.u32 %s1354_s4, 4  ;;  %s1190_s17 = int_to_ptr.vmem [resolvable:$false] %s1189_s17 }
 0x15d   : > { %p1187_p5 = pnand %p1186_p9, %p1850_p2  ;;  %s1191_s8 = scalar_lea.vmem %s1190_s17, 512 }
 0x15e   : > { %p1192_p3 = scmp.lt.s32.totalorder %s1679_s30, %s1190_s17  ;;  %p1193_p1 = scmp.lt.s32.totalorder %s1191_s8, %s1185_s6 }
 0x15f   : > { %s1685_s18 = scalar_lea.hbm %s1851_s19, %s1623_s23  ;;  %p1188_p11 = pneg %p1187_p5 }
 0x160   : > { %s1853_s22 = smov %s1852_s24  ;;  %s1694_s5 = scalar_lea.hbm %s1852_s24, %s1623_s23 }
 0x161   : > { %p1194_p7 = por %p1193_p1, %p1192_p3 }
 0x163   : > { %p1195_p10 = pnand %p1194_p7, %p1188_p11 }
 0x1b5   : > { %v574_v57 = vpop.permute.xlu0 %573 }
 0x1b6   : > { %v578_v56 = vpop.permute.xlu1 %577  ;;  %585 = vst.msk [vmem:[%s388_s2] sm:$0xf] %vm568_vm1, %v574_v57 }
 0x1b7   : > { %587 = vst.msk [vmem:[%s388_s2 + $0x8] sm:$0xf] %vm568_vm1, %v578_v56 }
 0x1b9   : > { %v576_v59 = vpop.permute.xlu0 %575 }
 0x1ba   : > { %v580_v58 = vpop.permute.xlu1 %579  ;;  %586 = vst.msk [vmem:[%s388_s2 + $0x4] sm:$0xf] %vm568_vm1, %v576_v59 }
 0x1bb   : > { %588 = vst.msk [vmem:[%s388_s2 + $0xc] sm:$0xf] %vm568_vm1, %v580_v58 }
 0x1bc   : > { %1198 = shalt.err (!%p1195_p10)
}
 0x1bd   : > { %s1199_s12 = scalar_lea.hbm %s1685_s18, 256  ;;  %s1203_s2 = scalar_lea.hbm %s1851_s19, 1024 }
 0x1be   : > { %p1200_p0 = scmp.ne.s32.totalorder %s1685_s18, %s1199_s12  ;;  %p1204_p12 = scmp.lt.s32.totalorder %s1685_s18, %s1851_s19 }
 0x1bf   : > { %p1205_p4 = scmp.lt.s32.totalorder %s1203_s2, %s1199_s12 }
 0x1c0   : > { %p1201_p6 = pnand %p1200_p0, %p1850_p2 }
 0x1c1   : > { %p1206_p13 = por %p1205_p4, %p1204_p12 }
 0x1c2   : > { %p1202_p8 = pneg %p1201_p6 }
 0x1c4   : > { %p1207_p9 = pnand %p1206_p13, %p1202_p8 }
 0x1c6   : > { %1210 = shalt.err (!%p1207_p9)
}
 0x1c7   : > { %s1854_s8 = smov 64   ;;  %s1211_s24 = scalar_lea.vmem %s1687_s20, 256 }
 0x1c8   : > { %941 = dma.vmem_to_hbm [thread:$0]  (%p1850_p2), %s1679_s30, 256, %s1685_s18, %s1699_s9, %s1854_s8, %s1854_s8, %s1353_s3  }
 0x1c9   : > { %p1212_p5 = scmp.ne.s32.totalorder %s1687_s20, %s1211_s24  ;;  %s1355_s6 = smov [#allocation11]  }
 0x1ca   : > { %s1215_s4 = sshll.u32 %s1355_s6, 4  ;;  %s1216_s4 = int_to_ptr.vmem [resolvable:$false] %s1215_s4 }
 0x1cb   : > { %p1213_p11 = pnand %p1212_p5, %p1850_p2  ;;  %s1217_s17 = scalar_lea.vmem %s1216_s4, 512 }
 0x1cc   : > { %p1218_p1 = scmp.lt.s32.totalorder %s1687_s20, %s1216_s4  ;;  %p1219_p7 = scmp.lt.s32.totalorder %s1217_s17, %s1211_s24 }
 0x1cd   : > { %p1214_p3 = pneg %p1213_p11 }
 0x1ce   : > { %p1220_p10 = por %p1219_p7, %p1218_p1 }
 0x1d0   : > { %p1221_p0 = pnand %p1220_p10, %p1214_p3 }
 0x1d2   : > { %1224 = shalt.err (!%p1221_p0)
}
 0x1d3   : > { %s1225_s12 = scalar_lea.hbm %s1694_s5, 256  ;;  %s1229_s16 = scalar_lea.hbm %s1853_s22, 1024 }
 0x1d4   : > { %p1226_p6 = scmp.ne.s32.totalorder %s1694_s5, %s1225_s12  ;;  %p1230_p4 = scmp.lt.s32.totalorder %s1694_s5, %s1853_s22 }
 0x1d5   : > { %p1231_p13 = scmp.lt.s32.totalorder %s1229_s16, %s1225_s12 }
 0x1d6   : > { %p1227_p8 = pnand %p1226_p6, %p1850_p2 }
 0x1d7   : > { %p1232_p9 = por %p1231_p13, %p1230_p4 }
 0x1d8   : > { %p1228_p12 = pneg %p1227_p8 }
 0x1da   : > { %p1233_p5 = pnand %p1232_p9, %p1228_p12 }
 0x1dc   : > { %1236 = shalt.err (!%p1233_p5)
}
 0x1dd   : > { %942 = dma.vmem_to_hbm [thread:$0]  (%p1850_p2), %s1687_s20, 256, %s1694_s5, %s1699_s9, %s1854_s8, %s1854_s8, %s1353_s3  }
 0x1de PF: > { %s1855_s27 = sld [smem:[#allocation17_spill]]  ;;  %p970_p11 = scmp.ge.s32.totalorder %s1343_s11, 2 }
 0x1df   : > { %s1856_s13 = sld [smem:[#allocation20_spill]] }
 0x1e4   : > { %s686_s24 = sand.u32 1, %s1855_s27  }
 0x1e5   : > { %p1857_p3 = scmp.ne.s32.totalorder %s1856_s13, 0  ;;  %s687_s6 = scalar_lea.sflag [#allocation4], %s686_s24 }
 0x1e7   : > { %p958_p1 = pnand %p970_p11, %p1857_p3 }
 0x1e9   : > { %p959_p7 = pneg %p958_p1 }
 0x1eb   : > { %1294 = dma.done.wait (%p959_p7), %s687_s6, 256  }
 0x1ec   : > { %1296 = vsyncadd (%p959_p7), %s687_s6, 4294967040  ;;  %s1858_s14 = sadd.s32 4294967294, %s1343_s11  }
 0x1ed   : > { %s695_s4 = sand.u32 1, %s1858_s14  }
 0x1ee   : > { %s696_s17 = scalar_lea.sflag [#allocation10], %s695_s4 }
 0x1ef   : > { %1298 = dma.done.wait (%p959_p7), %s696_s17, 512  }
 0x1f0   : > { %1300 = vsyncadd (%p959_p7), %s696_s17, 4294966784  ;;  %s30_s11 = sadd.s32 1, %s1343_s11   ;;  %s1859_s30 = sld [smem:[#allocation19_spill]] }
 0x1f1   : > { %p27_p2 = scmp.ge.s32.totalorder %s30_s11, 6   ;;  %s1860_s9 = sld [smem:[#allocation21_spill]] }
 0x1f2   : > { %s1861_s3 = sld [smem:[#allocation23_spill]]  ;;  %s1862_s24 = smov %s1307_s25 }
 0x1f3   : > { %s1863_s25 = smov %s1311_s26  ;;  %s1864_s26 = smov %s1547_s15 }
 0x1f4   : > { %s1865_s27 = smov %s1319_s28  ;;  %s1866_s28 = smov %s1323_s29 }
 0x1f5   : > { %s1867_s29 = smov %s1523_s7  ;;  %s1868_s8 = smov %s1339_s10 }
 0x1f6   :  { %29 = sbr.rel (!%p27_p2) target bundleno = 20 (0x14), region = 137 }
 0x1f8   : > { %s1869_s10 = smov %s1861_s3 }
 0x1fb   :  { %710 = vsyncpa [#allocation3], 1 }
 0x1fc   :  { %712 = vsyncpa [#allocation3 + $0x1], 1 }
 0x1fd   :  { %713 = vsyncpa [#allocation6], 1 }
 0x1fe   :  { %715 = vsyncpa [#allocation6 + $0x1], 1 }
 0x1ff   :  { %716 = vsyncpa [#allocation4], 1 }
 0x200   :  { %718 = vsyncpa [#allocation4 + $0x1], 1 }
 0x201   :  { %719 = vsyncpa [#allocation10], 1 }
 0x202   :  { %721 = vsyncpa [#allocation10 + $0x1], 1 }

</bundles_post_ra>
